<compile_context>
chip_gen: v7x
topology: tpu7x:2x2x1
jax: 0.10.0
libtpu: 0.0.40
codegen_flags: <defaults>
</compile_context>

<pallas_src>
import functools

import jax
import jax.numpy as jnp
from jax import lax
from jax.experimental import pallas as pl
from jax.experimental.pallas import tpu as pltpu


# Conservative per-grid-step VMEM budget (fits v5e's 16 MiB scoped default and
# v7x's smaller physical VMEM with double-buffering headroom).
_VMEM_STEP_BUDGET = 8 * 1024 * 1024


def _shift_left(a, k):
    """a[..., j] -> a[..., j + k] with wrap-around on the lane axis.

    The wrapped (last k) columns are garbage for our purposes and are sliced
    off by the wrapper; using a wrap-shift keeps the result full lane width so
    the output store stays unmasked.
    """
    return jnp.concatenate([a[..., k:], a[..., :k]], axis=-1)


def _sobel_response(x):
    """Separable Sobel + |g| * exp(-|g|) response.

    x: (..., R, W) float32. Returns (..., R - 2, W); the last 2 lane columns
    hold wrapped garbage (caller slices them off).
    """
    r = x.shape[-2]
    ro = r - 2
    top = x[..., 0:ro, :]
    mid = x[..., 1:ro + 1, :]
    bot = x[..., 2:ro + 2, :]
    # Vertical (sublane) passes.
    t1 = top + 2.0 * mid + bot          # smoothing  [1, 2, 1]^T  (for grad_x)
    t2 = bot - top                      # derivative [-1, 0, 1]^T (for grad_y)
    # Horizontal (lane) passes.
    gx = _shift_left(t1, 2) - t1                                  # [-1, 0, 1]
    gy = t2 + 2.0 * _shift_left(t2, 1) + _shift_left(t2, 2)       # [ 1, 2, 1]
    agx = jnp.abs(gx)
    agy = jnp.abs(gy)
    return agx * jnp.exp(-agx) + agy * jnp.exp(-agy)


# ---------------------------------------------------------------------------
# Path 1: whole image(s) per grid step (small / moderate images).
# ---------------------------------------------------------------------------
def _sobel_batch_kernel(x_ref, o_ref):
    # x_ref: (TN, 1, H, W) ; o_ref: (TN, 1, H - 2, W)  (lane-dense width W)
    x = x_ref[:, 0, :, :].astype(jnp.float32)          # (TN, H, W)
    o_ref[:, 0, :, :] = _sobel_response(x).astype(o_ref.dtype)


# ---------------------------------------------------------------------------
# Path 2: row-tiled with 2-row halo, manual double-buffered DMA (large images).
# ---------------------------------------------------------------------------
def _sobel_rowtile_kernel(x_hbm, o_ref, buf, sem, *, th):
    n = pl.program_id(0)
    h = pl.program_id(1)
    nh = pl.num_programs(1)
    slot = h & 1

    def dma(hh, s):
        start = pl.multiple_of(hh * th, 8)             # th is a multiple of 8
        return pltpu.make_async_copy(
            x_hbm.at[n, 0, pl.ds(start, th + 2), :], buf.at[s], sem.at[s])

    @pl.when(h == 0)
    def _():                                           # prime the first tile
        dma(0, 0).start()

    dma(h, slot).wait()                                # current tile ready

    @pl.when(h + 1 < nh)
    def _():                                           # prefetch next tile
        dma(h + 1, 1 - slot).start()

    x = buf[slot].astype(jnp.float32)                  # (th + 2, W)
    o_ref[0, 0, :, :] = _sobel_response(x).astype(o_ref.dtype)


# ---------------------------------------------------------------------------
# Path 3: fused mean (gradient()) — no full-size output writeback.
# ---------------------------------------------------------------------------
def _sobel_sum_kernel(x_ref, psum_ref, *, n_total, wo, tn):
    b = pl.program_id(0)
    x = x_ref[:, 0, :, :].astype(jnp.float32)          # (TN, H, W)
    out = _sobel_response(x)                           # (TN, Ho, W)
    img = lax.broadcasted_iota(jnp.int32, out.shape, 0) + b * tn
    col = lax.broadcasted_iota(jnp.int32, out.shape, 2)
    valid = jnp.logical_and(img < n_total, col < wo)
    s = jnp.sum(jnp.where(valid, out, 0.0))
    psum_ref[...] = jnp.broadcast_to(s, psum_ref.shape).astype(psum_ref.dtype)


# ---------------------------------------------------------------------------
# Wrappers
# ---------------------------------------------------------------------------
def gradient_net_forward(x, *, row_tile=None):
    """x: (N, 1, H, W) float32/bfloat16 -> (N, 1, H-2, W-2) in x.dtype."""
    N, C, H, W = x.shape
    assert C == 1, "Gradient_Net uses single-channel (1,1,3,3) Sobel weights"
    assert H >= 3 and W >= 3
    Ho, Wo = H - 2, W - 2
    out_dtype = x.dtype

    per_image = 16 * H * W                     # ~double-buffered in+out, f32
    use_row_tiles = (row_tile is not None) or (per_image > _VMEM_STEP_BUDGET)

    if not use_row_tiles:
        tn = max(1, min(N, _VMEM_STEP_BUDGET // per_image))
        nb = pl.cdiv(N, tn)
        out = pl.pallas_call(
            _sobel_batch_kernel,
            out_shape=jax.ShapeDtypeStruct((N, 1, Ho, W), out_dtype),
            grid_spec=pltpu.PrefetchScalarGridSpec(
                num_scalar_prefetch=0,
                grid=(nb,),
                in_specs=[pl.BlockSpec((tn, 1, H, W), lambda b: (b, 0, 0, 0))],
                out_specs=pl.BlockSpec((tn, 1, Ho, W), lambda b: (b, 0, 0, 0)),
            ),
            compiler_params=pltpu.CompilerParams(
                dimension_semantics=("parallel",)),
        )(x)
        return out[:, :, :, :Wo]

    # Row-tiled path: TH output rows per step, TH+2 input rows (halo) fetched
    # by a manual double-buffered DMA from HBM (input kept in pl.ANY space).
    if row_tile is None:
        row_tile = _VMEM_STEP_BUDGET // (16 * W)
    th = max(8, (int(row_tile) // 8) * 8)
    nh = pl.cdiv(Ho, th)
    h_pad = nh * th + 2
    if h_pad > H:
        x = jnp.pad(x, ((0, 0), (0, 0), (0, h_pad - H), (0, 0)))

    out = pl.pallas_call(
        functools.partial(_sobel_rowtile_kernel, th=th),
        out_shape=jax.ShapeDtypeStruct((N, 1, nh * th, W), out_dtype),
        grid_spec=pltpu.PrefetchScalarGridSpec(
            num_scalar_prefetch=0,
            grid=(N, nh),
            in_specs=[pl.BlockSpec(memory_space=pl.ANY)],
            out_specs=pl.BlockSpec((1, 1, th, W), lambda n, h: (n, 0, h, 0)),
            scratch_shapes=[
                pltpu.VMEM((2, th + 2, W), x.dtype),
                pltpu.SemaphoreType.DMA((2,)),
            ],
        ),
        compiler_params=pltpu.CompilerParams(
            dimension_semantics=("parallel", "arbitrary")),
    )(x)
    return out[:, :, :Ho, :Wo]


def gradient(x):
    """Equivalent of the module-level gradient(x): mean of the edge response."""
    N, C, H, W = x.shape
    assert C == 1
    Ho, Wo = H - 2, W - 2

    per_image = 16 * H * W
    if per_image > _VMEM_STEP_BUDGET:
        # TODO(synk): fuse the mean reduction into the row-tiled path as well.
        return jnp.mean(gradient_net_forward(x))

    tn = max(1, min(N, _VMEM_STEP_BUDGET // per_image))
    nb = pl.cdiv(N, tn)
    psums = pl.pallas_call(
        functools.partial(_sobel_sum_kernel, n_total=N, wo=Wo, tn=tn),
        out_shape=jax.ShapeDtypeStruct((nb, 8, 128), jnp.float32),
        grid_spec=pltpu.PrefetchScalarGridSpec(
            num_scalar_prefetch=0,
            grid=(nb,),
            in_specs=[pl.BlockSpec((tn, 1, H, W), lambda b: (b, 0, 0, 0))],
            out_specs=pl.BlockSpec((1, 8, 128), lambda b: (b, 0, 0)),
        ),
        compiler_params=pltpu.CompilerParams(
            dimension_semantics=("parallel",)),
    )(x)
    return jnp.sum(psums[:, 0, 0]) / (N * Ho * Wo)


def _reference_forward(x):
    # Pure-JAX reference via lax.conv for verification.
    kx = jnp.array([[-1.0, 0.0, 1.0],
                    [-2.0, 0.0, 2.0],
                    [-1.0, 0.0, 1.0]], jnp.float32).reshape(1, 1, 3, 3)
    ky = jnp.array([[-1.0, -2.0, -1.0],
                    [0.0, 0.0, 0.0],
                    [1.0, 2.0, 1.0]], jnp.float32).reshape(1, 1, 3, 3)
    gx = lax.conv_general_dilated(x.astype(jnp.float32), kx, (1, 1), "VALID",
                                  dimension_numbers=("NCHW", "OIHW", "NCHW"))
    gy = lax.conv_general_dilated(x.astype(jnp.float32), ky, (1, 1), "VALID",
                                  dimension_numbers=("NCHW", "OIHW", "NCHW"))
    agx, agy = jnp.abs(gx), jnp.abs(gy)
    return agx * jnp.exp(-agx) + agy * jnp.exp(-agy)


if __name__ == "__main__":
    key = jax.random.PRNGKey(0)
    x = jax.random.normal(key, (2, 1, 16, 16), dtype=jnp.float32)

    ref = _reference_forward(x)

    # Default (whole-image, batched) path.
    out = jax.block_until_ready(gradient_net_forward(x))
    assert out.shape == (2, 1, 14, 14), out.shape
    assert jnp.allclose(out, ref, atol=1e-5, rtol=1e-5), "batched path mismatch"

    # Row-tiled (manual-DMA) path, forced on the small input to validate it.
    out_t = jax.block_until_ready(gradient_net_forward(x, row_tile=8))
    assert out_t.shape == (2, 1, 14, 14), out_t.shape
    assert jnp.allclose(out_t, ref, atol=1e-5, rtol=1e-5), "tiled path mismatch"

    # Fused-mean path.
    g = jax.block_until_ready(gradient(x))
    g_ref = jnp.mean(ref)
    assert jnp.isfinite(g)
    assert jnp.allclose(g, g_ref, atol=1e-5, rtol=1e-5), "fused mean mismatch"

    print("KERNEL_OK")
</pallas_src>

<mosaic_0001>
module attributes {stable_mosaic.version = 11 : i64} {
  func.func @_sobel_batch_kernel(%arg0: i32, %arg1: memref<2x1x16x16xf32, #tpu.memory_space<vmem>>, %arg2: memref<2x1x14x16xf32, #tpu.memory_space<vmem>>) attributes {dimension_semantics = [#tpu.dimension_semantics<parallel>], iteration_bounds = array<i64: 1>, scalar_prefetch = 0 : i64, scratch_operands = 0 : i64, tpu.core_type = #tpu.core_type<tc>, window_params = [{transform_indices = @transform_0, window_bounds = array<i64: 2, 1, 16, 16>}, {transform_indices = @transform_1, window_bounds = array<i64: 2, 1, 14, 16>}]} {
    %c0 = arith.constant 0 : index
    %c0_0 = arith.constant 0 : index
    %c0_1 = arith.constant 0 : index
    %c0_2 = arith.constant 0 : index
    %0 = vector.load %arg1[%c0, %c0_0, %c0_1, %c0_2] : memref<2x1x16x16xf32, #tpu.memory_space<vmem>>, vector<2x1x16x16xf32>
    %1 = vector.shape_cast %0 : vector<2x1x16x16xf32> to vector<2x16x16xf32>
    %2 = vector.extract_strided_slice %1 {offsets = [0, 0, 0], sizes = [2, 14, 16], strides = [1, 1, 1]} : vector<2x16x16xf32> to vector<2x14x16xf32>
    %3 = vector.extract_strided_slice %1 {offsets = [0, 1, 0], sizes = [2, 14, 16], strides = [1, 1, 1]} : vector<2x16x16xf32> to vector<2x14x16xf32>
    %4 = vector.extract_strided_slice %1 {offsets = [0, 2, 0], sizes = [2, 14, 16], strides = [1, 1, 1]} : vector<2x16x16xf32> to vector<2x14x16xf32>
    %cst = arith.constant 2.000000e+00 : f32
    %5 = vector.broadcast %cst : f32 to vector<2x14x16xf32>
    %6 = arith.mulf %5, %3 : vector<2x14x16xf32>
    %7 = arith.addf %2, %6 : vector<2x14x16xf32>
    %8 = arith.addf %7, %4 : vector<2x14x16xf32>
    %9 = arith.subf %4, %2 : vector<2x14x16xf32>
    %10 = vector.extract_strided_slice %8 {offsets = [0, 0, 2], sizes = [2, 14, 14], strides = [1, 1, 1]} : vector<2x14x16xf32> to vector<2x14x14xf32>
    %11 = vector.extract_strided_slice %8 {offsets = [0, 0, 0], sizes = [2, 14, 2], strides = [1, 1, 1]} : vector<2x14x16xf32> to vector<2x14x2xf32>
    %12 = tpu.concatenate %10, %11 in 2 : vector<2x14x14xf32>, vector<2x14x2xf32> -> vector<2x14x16xf32>
    %13 = arith.subf %12, %8 : vector<2x14x16xf32>
    %14 = vector.extract_strided_slice %9 {offsets = [0, 0, 1], sizes = [2, 14, 15], strides = [1, 1, 1]} : vector<2x14x16xf32> to vector<2x14x15xf32>
    %15 = vector.extract_strided_slice %9 {offsets = [0, 0, 0], sizes = [2, 14, 1], strides = [1, 1, 1]} : vector<2x14x16xf32> to vector<2x14x1xf32>
    %16 = tpu.concatenate %14, %15 in 2 : vector<2x14x15xf32>, vector<2x14x1xf32> -> vector<2x14x16xf32>
    %cst_3 = arith.constant 2.000000e+00 : f32
    %17 = vector.broadcast %cst_3 : f32 to vector<2x14x16xf32>
    %18 = arith.mulf %17, %16 : vector<2x14x16xf32>
    %19 = arith.addf %9, %18 : vector<2x14x16xf32>
    %20 = vector.extract_strided_slice %9 {offsets = [0, 0, 2], sizes = [2, 14, 14], strides = [1, 1, 1]} : vector<2x14x16xf32> to vector<2x14x14xf32>
    %21 = vector.extract_strided_slice %9 {offsets = [0, 0, 0], sizes = [2, 14, 2], strides = [1, 1, 1]} : vector<2x14x16xf32> to vector<2x14x2xf32>
    %22 = tpu.concatenate %20, %21 in 2 : vector<2x14x14xf32>, vector<2x14x2xf32> -> vector<2x14x16xf32>
    %23 = arith.addf %19, %22 : vector<2x14x16xf32>
    %24 = math.absf %13 : vector<2x14x16xf32>
    %25 = math.absf %23 : vector<2x14x16xf32>
    %cst_4 = arith.constant 0.000000e+00 : f32
    %26 = vector.broadcast %cst_4 : f32 to vector<2x14x16xf32>
    %27 = arith.subf %26, %24 : vector<2x14x16xf32>
    %28 = math.exp %27 : vector<2x14x16xf32>
    %29 = arith.mulf %24, %28 : vector<2x14x16xf32>
    %cst_5 = arith.constant 0.000000e+00 : f32
    %30 = vector.broadcast %cst_5 : f32 to vector<2x14x16xf32>
    %31 = arith.subf %30, %25 : vector<2x14x16xf32>
    %32 = math.exp %31 : vector<2x14x16xf32>
    %33 = arith.mulf %25, %32 : vector<2x14x16xf32>
    %34 = arith.addf %29, %33 : vector<2x14x16xf32>
    %c0_6 = arith.constant 0 : index
    %c0_7 = arith.constant 0 : index
    %c0_8 = arith.constant 0 : index
    %c0_9 = arith.constant 0 : index
    %35 = vector.load %arg2[%c0_6, %c0_7, %c0_8, %c0_9] : memref<2x1x14x16xf32, #tpu.memory_space<vmem>>, vector<2x1x14x16xf32>
    %36 = vector.shape_cast %35 : vector<2x1x14x16xf32> to vector<2x14x16xf32>
    %37 = vector.shape_cast %34 : vector<2x14x16xf32> to vector<2x1x14x16xf32>
    tpu.vector_store %arg2[%c0_6, %c0_7, %c0_8, %c0_9], %37 {strides = array<i32>} : memref<2x1x14x16xf32, #tpu.memory_space<vmem>>, vector<2x1x14x16xf32>,
    return
  }
  func.func @transform_0(%arg0: i32) -> (i32, i32, i32, i32) {
    %c0_i32 = arith.constant 0 : i32
    %c0_i32_0 = arith.constant 0 : i32
    %c0_i32_1 = arith.constant 0 : i32
    %c0_i32_2 = arith.constant 0 : i32
    return %arg0, %c0_i32, %c0_i32_0, %c0_i32_1 : i32, i32, i32, i32
  }
  func.func @transform_1(%arg0: i32) -> (i32, i32, i32, i32) {
    %c0_i32 = arith.constant 0 : i32
    %c0_i32_0 = arith.constant 0 : i32
    %c0_i32_1 = arith.constant 0 : i32
    %c0_i32_2 = arith.constant 0 : i32
    return %arg0, %c0_i32, %c0_i32_0, %c0_i32_1 : i32, i32, i32, i32
  }
}

</mosaic_0001>

<bundles_post_ra>
// kernel: tpu_custom_call.1
= control target key start
LH: loop header
LB: loop body
LE: loop exit
PB: predicated region body
PF: predicated region fallthrough
CT: control target
= control target key end

     0   :  { %6 = vsyncpa [#allocation3], 0  ;;  %s309_s6 = smov [#allocation2]   ;;  %s422_s0 = inlined_call_operand.hbm [shape: f32[2,1,16,16], index: 0, kind: input, shape index: {}]   ;;  %s423_s1 = inlined_call_operand.vmem [shape: f32[2,1,14,16], index: 1, kind: output, shape index: {}]  }
   0x1   :  { %s12_s7 = sshll.u32 %s309_s6, 4  ;;  %s285_s10 = scalar_lea.hbm %s422_s0, 512  ;;  %s13_s7 = int_to_ptr.vmem [resolvable:$true] %s12_s7 }
   0x2   :  { %p286_p0 = scmp.ne.s32.totalorder %s422_s0, %s285_s10  ;;  %p289_p1 = scmp.lt.u32.totalorder %s285_s10, %s422_s0 }
   0x4   :  { %p291_p2 = pnand %p289_p1, %p286_p0 }
   0x6   :  { %294 = shalt.err (!%p291_p2)
}
   0x7   :  { %s295_s15 = scalar_lea.vmem %s13_s7, 512  ;;  %p300_p4 = scmp.lt.s32.totalorder %s13_s7, %s13_s7 }
   0x8   :  { %p296_p3 = scmp.ne.s32.totalorder %s13_s7, %s295_s15  ;;  %p301_p5 = scmp.lt.s32.totalorder %s295_s15, %s295_s15 }
   0xa   :  { %p302_p6 = por %p301_p5, %p300_p4 }
   0xc   :  { %p303_p7 = pnand %p302_p6, %p296_p3 }
   0xe   :  { %306 = shalt.err (!%p303_p7)
}
   0xf   :  { %s310_s16 = smov 128   ;;  %s311_s17 = smov 8  }
  0x10   :  { %18 = dma.hbm_to_vmem [thread:$0]  %s422_s0, 512, %s13_s7, [#allocation3], %s310_s16, %s310_s16, %s311_s17  }
  0x11   :  { %307 = dma.done.wait [#allocation3], 512  }
  0x12   :  { %308 = vsyncadd [#allocation3], 4294966784  ;;  %v24_v0 = vld [vmem:[#allocation2 + $0x10] sm:$0xff]  ;;  %v22_v1 = vld [vmem:[#allocation2] sm:$0xff]  ;;  %vm68_vm0 = vcmask 1041408   ;;  %s312_s20 = smov 127  }
  0x13   :  { %v25_v2 = vld [vmem:[#allocation2 + $0x18] sm:$0xff]  ;;  %v72_v3 = vrot.slane %v24_v0, 6  ;;  %v69_v4 = vrot.slane %v22_v1, 6  ;;  %v23_v6 = vld [vmem:[#allocation2 + $0x8] sm:$0xff]  ;;  %s313_s0 = smov 15   ;;  %v26_v15 = vmul.f32 2.0, %v22_v1 }
  0x14   :  { %v73_v5 = vrot.slane %v25_v2, 6  ;;  %v70_v7 = vrot.slane %v23_v6, 6  ;;  %v27_v14 = vmul.f32 2.0, %v23_v6  ;;  %s314_s21 = smov 126   ;;  %v29_v18 = vmul.f32 2.0, %v25_v2  ;;  %s315_s22 = smov 14  }
  0x15   :  { %v338_v8 = vsub.f32 %v24_v0, %v72_v3  ;;  %v340_v9 = vsub.f32 %v22_v1, %v69_v4  ;;  %v35_v17 = vrot.slane %v26_v15, 1  ;;  %v28_v19 = vmul.f32 2.0, %v24_v0 }
  0x16   :  { %v74_v10 = vsel %vm68_vm0, %v72_v3, %v73_v5  ;;  %v71_v12 = vsel %vm68_vm0, %v69_v4, %v70_v7  ;;  %v36_v16 = vrot.slane %v27_v14, 1  ;;  %vm34_vm1 = vcmask 1046528  }
  0x17   :  { %128 = vrot.lane.b32.xlu1 %v338_v8, %s312_s20  ;;  %124 = vrot.lane.b32.xlu0 %v340_v9, %s312_s20  ;;  %v344_v11 = vsub.f32 %v25_v2, %v74_v10  ;;  %v348_v13 = vsub.f32 %v23_v6, %v71_v12  ;;  %v55_v20 = vrot.slane %v23_v6, 2  ;;  %v54_v22 = vrot.slane %v22_v1, 2 }
  0x18   :  { %v37_v21 = vsel %vm34_vm1, %v35_v17, %v36_v16  ;;  %v39_v23 = vrot.slane %v29_v18, 1  ;;  %v38_v24 = vrot.slane %v28_v19, 1  ;;  %vm53_vm2 = vcmask 1045504  }
  0x19   :  { %v46_v25 = vadd.f32 %v36_v16, %v23_v6  ;;  %v45_v26 = vadd.f32 %v37_v21, %v22_v1  ;;  %v56_v27 = vsel %vm53_vm2, %v54_v22, %v55_v20  ;;  %v58_v28 = vrot.slane %v25_v2, 2 }
  0x1a   :  { %v40_v29 = vsel %vm34_vm1, %v38_v24, %v39_v23  ;;  %v57_v30 = vrot.slane %v24_v0, 2  ;;  %v48_v33 = vadd.f32 %v39_v23, %v25_v2  ;;  %vm148_vm3 = vcmask 121856  }
  0x1b   :  { %130 = vrot.lane.b32.xlu1 %v344_v11, %s312_s20  ;;  %136 = vrot.lane.b32.xlu0 %v340_v9, %s313_s0  ;;  %v367_v31 = vadd.f32 %v55_v20, %v46_v25  ;;  %v371_v32 = vadd.f32 %v56_v27, %v45_v26  ;;  %v47_v34 = vadd.f32 %v40_v29, %v24_v0  ;;  %vm111_vm4 = vcmask 113664  }
  0x1c   :  { %v59_v35 = vsel %vm53_vm2, %v57_v30, %v58_v28  ;;  %v378_v36 = vadd.f32 %v58_v28, %v48_v33  ;;  %vm253_vm5 = vcmask 128000   ;;  %vm251_vm6 = vcmask 130048  }
  0x1d   :  { %v380_v37 = vadd.f32 %v59_v35, %v47_v34 }
  0x1f   :  { %140 = vrot.lane.b32.xlu0 %v338_v8, %s313_s0  ;;  %138 = vrot.lane.b32.xlu1 %v348_v13, %s313_s0 }
  0x23   :  { %142 = vrot.lane.b32.xlu1 %v344_v11, %s313_s0  ;;  %126 = vrot.lane.b32.xlu0 %v348_v13, %s312_s20 }
  0x27   :  { %163 = vrot.lane.b32.xlu1 %v348_v13, %s314_s21  ;;  %161 = vrot.lane.b32.xlu0 %v340_v9, %s314_s21 }
  0x2b   :  { %167 = vrot.lane.b32.xlu1 %v344_v11, %s314_s21  ;;  %165 = vrot.lane.b32.xlu0 %v338_v8, %s314_s21 }
  0x2f   :  { %175 = vrot.lane.b32.xlu1 %v348_v13, %s315_s22  ;;  %173 = vrot.lane.b32.xlu0 %v340_v9, %s315_s22 }
  0x33   :  { %179 = vrot.lane.b32.xlu1 %v344_v11, %s315_s22  ;;  %177 = vrot.lane.b32.xlu0 %v338_v8, %s315_s22 }
  0x37   :  { %89 = vrot.lane.b32.xlu1 %v367_v31, %s314_s21  ;;  %87 = vrot.lane.b32.xlu0 %v371_v32, %s314_s21 }
  0x3b   :  { %93 = vrot.lane.b32.xlu1 %v378_v36, %s314_s21  ;;  %91 = vrot.lane.b32.xlu0 %v380_v37, %s314_s21 }
  0x3f   :  { %101 = vrot.lane.b32.xlu1 %v367_v31, %s315_s22  ;;  %99 = vrot.lane.b32.xlu0 %v371_v32, %s315_s22 }
  0x43   :  { %105 = vrot.lane.b32.xlu1 %v378_v36, %s315_s22  ;;  %103 = vrot.lane.b32.xlu0 %v380_v37, %s315_s22 }
  0x89   :  { %v129_v38 = vpop.permute.xlu1 %128  ;;  %v125_v39 = vpop.permute.xlu0 %124 }
  0x8d   :  { %v131_v40 = vpop.permute.xlu1 %130  ;;  %v137_v41 = vpop.permute.xlu0 %136 }
  0x8e   :  { %v149_v48 = vsel %vm148_vm3, %v125_v39, %v137_v41 }
  0x8f   :  { %v153_v50 = vmul.f32 2.0, %v149_v48 }
  0x91   :  { %v141_v42 = vpop.permute.xlu0 %140  ;;  %v139_v43 = vpop.permute.xlu1 %138  ;;  %v157_v56 = vadd.f32 %v153_v50, %v340_v9 }
  0x92   :  { %v151_v55 = vsel %vm148_vm3, %v129_v38, %v141_v42 }
  0x93   :  { %v155_v61 = vmul.f32 2.0, %v151_v55 }
  0x95   :  { %v143_v44 = vpop.permute.xlu1 %142  ;;  %v127_v45 = vpop.permute.xlu0 %126  ;;  %v159_v5 = vadd.f32 %v155_v61, %v338_v8 }
  0x96   :  { %v150_v49 = vsel %vm148_vm3, %v127_v45, %v139_v43  ;;  %v152_v54 = vsel %vm148_vm3, %v131_v40, %v143_v44 }
  0x97   :  { %v154_v51 = vmul.f32 2.0, %v150_v49  ;;  %v156_v57 = vmul.f32 2.0, %v152_v54 }
  0x99   :  { %v164_v46 = vpop.permute.xlu1 %163  ;;  %v162_v47 = vpop.permute.xlu0 %161  ;;  %v158_v58 = vadd.f32 %v154_v51, %v348_v13  ;;  %v160_v2 = vadd.f32 %v156_v57, %v344_v11 }
  0x9d   :  { %v168_v52 = vpop.permute.xlu1 %167  ;;  %v166_v53 = vpop.permute.xlu0 %165 }
  0xa1   :  { %v176_v59 = vpop.permute.xlu1 %175  ;;  %v174_v60 = vpop.permute.xlu0 %173 }
  0xa2   :  { %v186_v62 = vsel %vm111_vm4, %v164_v46, %v176_v59  ;;  %v185_v63 = vsel %vm111_vm4, %v162_v47, %v174_v60 }
  0xa3   :  { %v190_v0 = vadd.f32 %v186_v62, %v158_v58  ;;  %v189_v1 = vadd.f32 %v185_v63, %v157_v56 }
  0xa5   :  { %v180_v3 = vpop.permute.xlu1 %179  ;;  %v178_v4 = vpop.permute.xlu0 %177  ;;  %v198_v6 = vand.u32 2147483647, %v190_v0  ;;  %v197_v10 = vand.u32 2147483647, %v189_v1 }
  0xa6   :  { %v188_v7 = vsel %vm111_vm4, %v168_v52, %v180_v3  ;;  %v187_v9 = vsel %vm111_vm4, %v166_v53, %v178_v4 }
  0xa7   :  { %v192_v12 = vadd.f32 %v188_v7, %v160_v2  ;;  %v191_v13 = vadd.f32 %v187_v9, %v159_v5  ;;  %v218_v16 = vsub.f32 0.0, %v198_v6  ;;  %v217_v17 = vsub.f32 0.0, %v197_v10 }
  0xa9   :  { %v90_v14 = vpop.permute.xlu1 %89  ;;  %v88_v15 = vpop.permute.xlu0 %87  ;;  %v200_v18 = vand.u32 2147483647, %v192_v12  ;;  %v199_v19 = vand.u32 2147483647, %v191_v13  ;;  %v223_v21 = vmul.f32 1.442695, %v218_v16 }
  0xaa   :  { %v221_v22 = vmul.f32 1.442695, %v217_v17 }
  0xab   :  { %v220_v23 = vsub.f32 0.0, %v200_v18  ;;  %v219_v8 = vsub.f32 0.0, %v199_v19  ;;  %269 = vpow2.f32 %v223_v21 }
  0xac   :  { %271 = vpow2.f32 %v221_v22 }
  0xad   :  { %v94_v20 = vpop.permute.xlu1 %93  ;;  %v92_v11 = vpop.permute.xlu0 %91  ;;  %v227_v28 = vmul.f32 1.442695, %v220_v23  ;;  %v225_v33 = vmul.f32 1.442695, %v219_v8 }
  0xaf   :  { %273 = vpow2.f32 %v227_v28 }
  0xb0   :  { %275 = vpow2.f32 %v225_v33 }
  0xb1   :  { %v102_v24 = vpop.permute.xlu1 %101  ;;  %v100_v25 = vpop.permute.xlu0 %99 }
  0xb2   :  { %v113_v26 = vsel %vm111_vm4, %v90_v14, %v102_v24  ;;  %v112_v27 = vsel %vm111_vm4, %v88_v15, %v100_v25 }
  0xb3   :  { %v117_v29 = vsub.f32 %v113_v26, %v367_v31  ;;  %v116_v30 = vsub.f32 %v112_v27, %v371_v32 }
  0xb5   :  { %v194_v34 = vand.u32 2147483647, %v117_v29  ;;  %v193_v35 = vand.u32 2147483647, %v116_v30  ;;  %v106_v38 = vpop.permute.xlu1 %105  ;;  %v104_v39 = vpop.permute.xlu0 %103 }
  0xb6   :  { %v115_v40 = vsel %vm111_vm4, %v94_v20, %v106_v38  ;;  %v114_v41 = vsel %vm111_vm4, %v92_v11, %v104_v39  ;;  %v270_v48 = vpop.eup %269 }
  0xb7   :  { %v202_v42 = vsub.f32 0.0, %v194_v34  ;;  %v201_v43 = vsub.f32 0.0, %v193_v35  ;;  %v119_v44 = vsub.f32 %v115_v40, %v378_v36  ;;  %v118_v45 = vsub.f32 %v114_v41, %v380_v37  ;;  %v272_v51 = vpop.eup %271 }
  0xb8   :  { %v230_v54 = vmul.f32 %v270_v48, %v198_v6  ;;  %v229_v55 = vmul.f32 %v272_v51, %v197_v10 }
  0xb9   :  { %v207_v31 = vmul.f32 1.442695, %v202_v42  ;;  %v205_v46 = vmul.f32 1.442695, %v201_v43  ;;  %v196_v32 = vand.u32 2147483647, %v119_v44  ;;  %v274_v56 = vpop.eup %273 }
  0xba   :  { %v195_v47 = vand.u32 2147483647, %v118_v45  ;;  %v276_v36 = vpop.eup %275  ;;  %v238_v57 = vrot.slane %v230_v54, 2  ;;  %v237_v37 = vrot.slane %v229_v55, 2  ;;  %v232_v59 = vmul.f32 %v274_v56, %v200_v18 }
  0xbb   :  { %277 = vpow2.f32 %v207_v31  ;;  %v204_v49 = vsub.f32 0.0, %v196_v32  ;;  %v231_v60 = vmul.f32 %v276_v36, %v199_v19 }
  0xbc   :  { %279 = vpow2.f32 %v205_v46  ;;  %v203_v50 = vsub.f32 0.0, %v195_v47  ;;  %v239_v1 = vsel %vm53_vm2, %v237_v37, %v238_v57  ;;  %v241_v2 = vrot.slane %v232_v59, 2 }
  0xbd   :  { %v211_v52 = vmul.f32 1.442695, %v204_v49  ;;  %v240_v3 = vrot.slane %v231_v60, 2 }
  0xbe   :  { %v209_v53 = vmul.f32 1.442695, %v203_v50 }
  0xbf   :  { %281 = vpow2.f32 %v211_v52  ;;  %v242_v12 = vsel %vm53_vm2, %v240_v3, %v241_v2 }
  0xc0   :  { %283 = vpow2.f32 %v209_v53 }
  0xc5   :  { %v278_v58 = vpop.eup %277 }
  0xc6   :  { %v280_v61 = vpop.eup %279  ;;  %v214_v62 = vmul.f32 %v278_v58, %v194_v34 }
  0xc7   :  { %v213_v63 = vmul.f32 %v280_v61, %v193_v35 }
  0xc8   :  { %v248_v0 = vadd.f32 %v238_v57, %v214_v62 }
  0xc9   :  { %v247_v4 = vadd.f32 %v239_v1, %v213_v63  ;;  %v282_v5 = vpop.eup %281 }
  0xca   :  { %254 = vst.msk [vmem:[%s423_s1 + $0x8] sm:$0x3f] %vm253_vm5, %v248_v0  ;;  %v284_v6 = vpop.eup %283  ;;  %v216_v7 = vmul.f32 %v282_v5, %v196_v32 }
  0xcb   :  { %252 = vst.msk [vmem:[%s423_s1] sm:$0xff] %vm251_vm6, %v247_v4  ;;  %v215_v9 = vmul.f32 %v284_v6, %v195_v47 }
  0xcc   :  { %v250_v10 = vadd.f32 %v241_v2, %v216_v7 }
  0xcd   :  { %v249_v13 = vadd.f32 %v242_v12, %v215_v9 }
  0xce   :  { %256 = vst.msk [vmem:[%s423_s1 + $0x18] sm:$0x3f] %vm253_vm5, %v250_v10 }
  0xcf   :  { %255 = vst.msk [vmem:[%s423_s1 + $0x10] sm:$0xff] %vm251_vm6, %v249_v13 }
  0xd0   :  { %261 = vsyncpa [#allocation3], 1 }

</bundles_post_ra>
